<compile_context>
chip_gen: v5e
topology: v5e:2x2
jax: 0.10.0
libtpu: 0.0.40
codegen_flags: <defaults>
</compile_context>

<pallas_src>
import functools

import jax
import jax.numpy as jnp
from jax.experimental import pallas as pl
from jax.experimental.pallas import tpu as pltpu

EPS = 1e-5

# Polyphase taps for ConvTranspose2d(kernel=4, stride=2, padding=1):
# output pixel (2a+py, 2b+px) = sum over taps of x[a+dy, b+dx] * W[cin, cout, ky, kx].
# Phase order: (py, px) = (0,0), (0,1), (1,0), (1,1).  Entries are (dy, dx, ky, kx).
_PHASE_TAPS = (
    ((0, 0, 1, 1), (0, -1, 1, 3), (-1, 0, 3, 1), (-1, -1, 3, 3)),  # (even, even)
    ((0, 1, 1, 0), (0, 0, 1, 2), (-1, 1, 3, 0), (-1, 0, 3, 2)),    # (even, odd)
    ((1, 0, 0, 1), (1, -1, 0, 3), (0, 0, 2, 1), (0, -1, 2, 3)),    # (odd, even)
    ((1, 1, 0, 0), (1, 0, 0, 2), (0, 1, 2, 0), (0, 0, 2, 2)),      # (odd, odd)
)


def _unet_up_kernel(x_ref, w_ref, o_ref):
    # x_ref: (1, K, HW)        bf16   shared 9-shift operand (K = 9*Cin, HW lane-dense)
    # w_ref: (4, TCO, K)       bf16   per-phase zero-padded weights for this Cout tile
    # o_ref: (1, 4, TCO, HW)   f32    staged raw outputs, normalized in place
    hw = x_ref.shape[-1]
    inv_n = 1.0 / (4.0 * hw)          # InstanceNorm averages over all Ho*Wo = 4*HW pixels
    xb = x_ref[0, :, :]

    # Pass 1: MXU matmuls, stage raw f32 results in o_ref, accumulate elementwise sum.
    s_elem = None
    for ph in range(4):
        y = jnp.dot(w_ref[ph, :, :], xb, preferred_element_type=jnp.float32)  # (TCO, HW)
        o_ref[0, ph, :, :] = y
        s_elem = y if ph == 0 else s_elem + y
    mean = s_elem.sum(axis=1, keepdims=True) * inv_n          # one XLU reduce -> (TCO, 1)

    # Pass 2: centered (two-pass) biased variance, streamed -- no per-phase d kept live.
    sq = None
    for ph in range(4):
        d = o_ref[0, ph, :, :] - mean
        sq = d * d if ph == 0 else sq + d * d
    inv_std = jax.lax.rsqrt(sq.sum(axis=1, keepdims=True) * inv_n + EPS)  # one XLU reduce + EUP

    # Pass 3: normalize + ReLU in place (recompute the cheap subtract).
    for ph in range(4):
        o_ref[0, ph, :, :] = jnp.maximum(
            (o_ref[0, ph, :, :] - mean) * inv_std, 0.0).astype(o_ref.dtype)


def _nine_shift_operand(x):
    """Shared 9-shift operand: (N, 9*Cin, H*W) bf16 (2.25x the input, vs 16x patches)."""
    N, Cin, H, W = x.shape
    xb = x.astype(jnp.bfloat16)
    xp = jnp.pad(xb, ((0, 0), (0, 0), (1, 1), (1, 1)))  # zero border for edge taps
    shifts = []
    for dy in (-1, 0, 1):
        for dx in (-1, 0, 1):
            shifts.append(xp[:, :, dy + 1:dy + 1 + H, dx + 1:dx + 1 + W])  # (N,Cin,H,W)
    return jnp.stack(shifts, axis=1).reshape(N, 9 * Cin, H * W)


def _phase_weights(weight):
    """Per-phase weight matrices over the 9-shift basis: (4, Cout, 9*Cin) bf16.

    weight: (Cin, Cout, 4, 4) in PyTorch ConvTranspose2d layout.  Each phase uses only
    4 of the 9 shift slots; the other slots are zero (the ~2.25x extra MXU FLOPs are
    cheap relative to the HBM traffic saved by sharing one operand across phases).
    """
    Cin, Cout = weight.shape[0], weight.shape[1]
    w = jnp.zeros((4, Cout, 9 * Cin), dtype=jnp.float32)
    for ph, taps in enumerate(_PHASE_TAPS):
        for dy, dx, ky, kx in taps:
            s = (dy + 1) * 3 + (dx + 1)
            w = w.at[ph, :, s * Cin:(s + 1) * Cin].set(weight[:, :, ky, kx].T)
    return w.astype(jnp.bfloat16)


def _pick_tile_co(cout):
    # Prefer 256 (v6e/v7x MXU width; also fine on v5e), fall back to smaller multiples
    # of 8, else the whole (untiled) Cout axis.
    for t in (256, 128, 64, 32, 16, 8):
        if cout >= t and cout % t == 0:
            return t
    return cout


def _vmem_limit_bytes(K, HW, tile_co):
    x_blk = K * HW * 2                 # bf16
    w_blk = 4 * tile_co * K * 2        # bf16
    o_blk = 4 * tile_co * HW * 4       # f32
    interm = 3 * tile_co * HW * 4      # live f32 temporaries (y / s_elem / d / sq)
    needed = 2 * (x_blk + w_blk + o_blk) + interm   # x2 for double buffering
    # Only raise above the 32 MiB default when needed; never request v7x's full 64 MiB.
    return int(min(48 * 1024 * 1024, max(32 * 1024 * 1024, 2 * needed)))


@jax.jit
def unet_up(x, skip_input, weight):
    """Forward pass of UNetUp.

    x:          (N, Cin, H, W)       float32, NCHW
    skip_input: (N, Cskip, 2H, 2W)   float32, NCHW
    weight:     (Cin, Cout, 4, 4)    PyTorch ConvTranspose2d weight layout
    returns:    (N, Cout + Cskip, 2H, 2W) float32
    """
    N, Cin, H, W = x.shape
    Cout = weight.shape[1]
    K = 9 * Cin
    HW = H * W

    x9 = _nine_shift_operand(x)          # (N, K, HW)  bf16
    wmats = _phase_weights(weight)       # (4, Cout, K) bf16

    tile_co = _pick_tile_co(Cout)
    n_co = Cout // tile_co

    out_ph = pl.pallas_call(
        _unet_up_kernel,
        out_shape=jax.ShapeDtypeStruct((N, 4, Cout, HW), jnp.float32),
        grid_spec=pltpu.PrefetchScalarGridSpec(
            num_scalar_prefetch=0,
            grid=(N, n_co),
            in_specs=[
                # Shared operand: index_map independent of the co axis -> stays resident.
                # TODO(synk): v5e: if the operand DMA is still exposed in xprof, add
                #             pipeline_mode=pl.Buffered(3) here.
                pl.BlockSpec((1, K, HW), lambda n, co: (n, 0, 0)),
                pl.BlockSpec((4, tile_co, K), lambda n, co: (0, co, 0)),
            ],
            out_specs=pl.BlockSpec((1, 4, tile_co, HW), lambda n, co: (n, 0, co, 0)),
        ),
        compiler_params=pltpu.CompilerParams(
            # InstanceNorm is per-channel, so Cout tiles are fully independent.
            dimension_semantics=("parallel", "parallel"),
            vmem_limit_bytes=_vmem_limit_bytes(K, HW, tile_co)),
    )(x9, wmats)                                               # (N, 4, Cout, HW) f32

    # Interleave the four phases back to NCHW (XLA glue) and concat with the skip.
    y = (out_ph.reshape(N, 2, 2, Cout, H, W)
         .transpose(0, 3, 4, 1, 5, 2)
         .reshape(N, Cout, 2 * H, 2 * W))
    # TODO(synk): dropout branch (dropout=0.0 in this config) is not implemented.
    return jnp.concatenate([y, skip_input], axis=1)


if __name__ == "__main__":
    key = jax.random.PRNGKey(0)
    k1, k2, k3 = jax.random.split(key, 3)

    N, Cin, H, W = 2, 4, 16, 16
    Cout, Cskip = 8, 8

    x = jax.random.normal(k1, (N, Cin, H, W), jnp.float32)
    skip = jax.random.normal(k2, (N, Cskip, 2 * H, 2 * W), jnp.float32)
    # deterministic ConvTranspose2d weight (Cin, Cout, 4, 4), bias=False
    weight = jax.random.normal(k3, (Cin, Cout, 4, 4), jnp.float32) * 0.1

    out = jax.block_until_ready(unet_up(x, skip, weight))
    assert out.shape == (N, Cout + Cskip, 2 * H, 2 * W), out.shape

    # Pure-JAX reference: transposed conv as lhs-dilated conv, then InstanceNorm+ReLU+cat.
    w_conv = jnp.transpose(jnp.flip(weight, axis=(2, 3)), (1, 0, 2, 3))  # (Cout,Cin,4,4)
    y_ref = jax.lax.conv_general_dilated(
        x, w_conv, window_strides=(1, 1), padding=((2, 2), (2, 2)),
        lhs_dilation=(2, 2), dimension_numbers=("NCHW", "OIHW", "NCHW"))
    mu = y_ref.mean(axis=(2, 3), keepdims=True)
    var = ((y_ref - mu) ** 2).mean(axis=(2, 3), keepdims=True)
    ref = jnp.concatenate(
        [jnp.maximum((y_ref - mu) * jax.lax.rsqrt(var + EPS), 0.0), skip], axis=1)
    err = float(jnp.max(jnp.abs(out - ref)))
    assert err < 1e-1, f"max abs error {err}"  # bf16 MXU operands vs f32 reference
    print("KERNEL_OK")
</pallas_src>

<mosaic_0001>
module attributes {stable_mosaic.version = 11 : i64} {
  func.func @_unet_up_kernel(%arg0: i32, %arg1: i32, %arg2: memref<1x36x256xbf16, #tpu.memory_space<vmem>>, %arg3: memref<4x8x36xbf16, #tpu.memory_space<vmem>>, %arg4: memref<1x4x8x256xf32, #tpu.memory_space<vmem>>) attributes {dimension_semantics = [#tpu.dimension_semantics<parallel>, #tpu.dimension_semantics<parallel>], iteration_bounds = array<i64: 2, 1>, scalar_prefetch = 0 : i64, scratch_operands = 0 : i64, tpu.core_type = #tpu.core_type<tc>, window_params = [{transform_indices = @transform_0, window_bounds = array<i64: 1, 36, 256>}, {transform_indices = @transform_1, window_bounds = array<i64: 4, 8, 36>}, {transform_indices = @transform_2, window_bounds = array<i64: 1, 4, 8, 256>}]} {
    %c0 = arith.constant 0 : index
    %c0_0 = arith.constant 0 : index
    %c0_1 = arith.constant 0 : index
    %0 = vector.load %arg2[%c0, %c0_0, %c0_1] : memref<1x36x256xbf16, #tpu.memory_space<vmem>>, vector<1x36x256xbf16>
    %1 = vector.shape_cast %0 : vector<1x36x256xbf16> to vector<36x256xbf16>
    %c0_2 = arith.constant 0 : index
    %c0_3 = arith.constant 0 : index
    %c0_4 = arith.constant 0 : index
    %2 = vector.load %arg3[%c0_2, %c0_3, %c0_4] : memref<4x8x36xbf16, #tpu.memory_space<vmem>>, vector<1x8x36xbf16>
    %3 = vector.shape_cast %2 : vector<1x8x36xbf16> to vector<8x36xbf16>
    %cst = arith.constant dense<0.000000e+00> : vector<8x256xf32>
    %4 = tpu.matmul %3, %1, %cst {dimension_numbers = #tpu.dot_dimension_numbers<[1], [0], [0], [1], [0, 0, 1, 1], [], []>} : vector<8x36xbf16>, vector<36x256xbf16>, vector<8x256xf32> -> vector<8x256xf32>
    %c0_5 = arith.constant 0 : index
    %c0_6 = arith.constant 0 : index
    %c0_7 = arith.constant 0 : index
    %c0_8 = arith.constant 0 : index
    %5 = vector.load %arg4[%c0_5, %c0_6, %c0_7, %c0_8] : memref<1x4x8x256xf32, #tpu.memory_space<vmem>>, vector<1x1x8x256xf32>
    %6 = vector.shape_cast %5 : vector<1x1x8x256xf32> to vector<8x256xf32>
    %7 = vector.shape_cast %4 : vector<8x256xf32> to vector<1x1x8x256xf32>
    tpu.vector_store %arg4[%c0_5, %c0_6, %c0_7, %c0_8], %7 {strides = array<i32>} : memref<1x4x8x256xf32, #tpu.memory_space<vmem>>, vector<1x1x8x256xf32>,
    %c1 = arith.constant 1 : index
    %c0_9 = arith.constant 0 : index
    %c0_10 = arith.constant 0 : index
    %8 = vector.load %arg3[%c1, %c0_9, %c0_10] : memref<4x8x36xbf16, #tpu.memory_space<vmem>>, vector<1x8x36xbf16>
    %9 = vector.shape_cast %8 : vector<1x8x36xbf16> to vector<8x36xbf16>
    %cst_11 = arith.constant dense<0.000000e+00> : vector<8x256xf32>
    %10 = tpu.matmul %9, %1, %cst_11 {dimension_numbers = #tpu.dot_dimension_numbers<[1], [0], [0], [1], [0, 0, 1, 1], [], []>} : vector<8x36xbf16>, vector<36x256xbf16>, vector<8x256xf32> -> vector<8x256xf32>
    %c0_12 = arith.constant 0 : index
    %c1_13 = arith.constant 1 : index
    %c0_14 = arith.constant 0 : index
    %c0_15 = arith.constant 0 : index
    %11 = vector.load %arg4[%c0_12, %c1_13, %c0_14, %c0_15] : memref<1x4x8x256xf32, #tpu.memory_space<vmem>>, vector<1x1x8x256xf32>
    %12 = vector.shape_cast %11 : vector<1x1x8x256xf32> to vector<8x256xf32>
    %13 = vector.shape_cast %10 : vector<8x256xf32> to vector<1x1x8x256xf32>
    tpu.vector_store %arg4[%c0_12, %c1_13, %c0_14, %c0_15], %13 {strides = array<i32>} : memref<1x4x8x256xf32, #tpu.memory_space<vmem>>, vector<1x1x8x256xf32>,
    %14 = arith.addf %4, %10 : vector<8x256xf32>
    %c2 = arith.constant 2 : index
    %c0_16 = arith.constant 0 : index
    %c0_17 = arith.constant 0 : index
    %15 = vector.load %arg3[%c2, %c0_16, %c0_17] : memref<4x8x36xbf16, #tpu.memory_space<vmem>>, vector<1x8x36xbf16>
    %16 = vector.shape_cast %15 : vector<1x8x36xbf16> to vector<8x36xbf16>
    %cst_18 = arith.constant dense<0.000000e+00> : vector<8x256xf32>
    %17 = tpu.matmul %16, %1, %cst_18 {dimension_numbers = #tpu.dot_dimension_numbers<[1], [0], [0], [1], [0, 0, 1, 1], [], []>} : vector<8x36xbf16>, vector<36x256xbf16>, vector<8x256xf32> -> vector<8x256xf32>
    %c0_19 = arith.constant 0 : index
    %c2_20 = arith.constant 2 : index
    %c0_21 = arith.constant 0 : index
    %c0_22 = arith.constant 0 : index
    %18 = vector.load %arg4[%c0_19, %c2_20, %c0_21, %c0_22] : memref<1x4x8x256xf32, #tpu.memory_space<vmem>>, vector<1x1x8x256xf32>
    %19 = vector.shape_cast %18 : vector<1x1x8x256xf32> to vector<8x256xf32>
    %20 = vector.shape_cast %17 : vector<8x256xf32> to vector<1x1x8x256xf32>
    tpu.vector_store %arg4[%c0_19, %c2_20, %c0_21, %c0_22], %20 {strides = array<i32>} : memref<1x4x8x256xf32, #tpu.memory_space<vmem>>, vector<1x1x8x256xf32>,
    %21 = arith.addf %14, %17 : vector<8x256xf32>
    %c3 = arith.constant 3 : index
    %c0_23 = arith.constant 0 : index
    %c0_24 = arith.constant 0 : index
    %22 = vector.load %arg3[%c3, %c0_23, %c0_24] : memref<4x8x36xbf16, #tpu.memory_space<vmem>>, vector<1x8x36xbf16>
    %23 = vector.shape_cast %22 : vector<1x8x36xbf16> to vector<8x36xbf16>
    %cst_25 = arith.constant dense<0.000000e+00> : vector<8x256xf32>
    %24 = tpu.matmul %23, %1, %cst_25 {dimension_numbers = #tpu.dot_dimension_numbers<[1], [0], [0], [1], [0, 0, 1, 1], [], []>} : vector<8x36xbf16>, vector<36x256xbf16>, vector<8x256xf32> -> vector<8x256xf32>
    %c0_26 = arith.constant 0 : index
    %c3_27 = arith.constant 3 : index
    %c0_28 = arith.constant 0 : index
    %c0_29 = arith.constant 0 : index
    %25 = vector.load %arg4[%c0_26, %c3_27, %c0_28, %c0_29] : memref<1x4x8x256xf32, #tpu.memory_space<vmem>>, vector<1x1x8x256xf32>
    %26 = vector.shape_cast %25 : vector<1x1x8x256xf32> to vector<8x256xf32>
    %27 = vector.shape_cast %24 : vector<8x256xf32> to vector<1x1x8x256xf32>
    tpu.vector_store %arg4[%c0_26, %c3_27, %c0_28, %c0_29], %27 {strides = array<i32>} : memref<1x4x8x256xf32, #tpu.memory_space<vmem>>, vector<1x1x8x256xf32>,
    %28 = arith.addf %21, %24 : vector<8x256xf32>
    %cst_30 = arith.constant dense<0.000000e+00> : vector<8xf32>
    %29 = vector.multi_reduction <add>, %28, %cst_30 [1] : vector<8x256xf32> to vector<8xf32>
    %30 = vector.shape_cast %29 : vector<8xf32> to vector<8x1xf32>
    %cst_31 = arith.constant 9.765625E-4 : f32
    %31 = vector.broadcast %cst_31 : f32 to vector<8x1xf32>
    %32 = arith.mulf %30, %31 : vector<8x1xf32>
    %c0_32 = arith.constant 0 : index
    %c0_33 = arith.constant 0 : index
    %c0_34 = arith.constant 0 : index
    %c0_35 = arith.constant 0 : index
    %33 = vector.load %arg4[%c0_32, %c0_33, %c0_34, %c0_35] : memref<1x4x8x256xf32, #tpu.memory_space<vmem>>, vector<1x1x8x256xf32>
    %34 = vector.shape_cast %33 : vector<1x1x8x256xf32> to vector<8x256xf32>
    %35 = vector.broadcast %32 : vector<8x1xf32> to vector<8x256xf32>
    %36 = arith.subf %34, %35 : vector<8x256xf32>
    %37 = arith.mulf %36, %36 : vector<8x256xf32>
    %c0_36 = arith.constant 0 : index
    %c1_37 = arith.constant 1 : index
    %c0_38 = arith.constant 0 : index
    %c0_39 = arith.constant 0 : index
    %38 = vector.load %arg4[%c0_36, %c1_37, %c0_38, %c0_39] : memref<1x4x8x256xf32, #tpu.memory_space<vmem>>, vector<1x1x8x256xf32>
    %39 = vector.shape_cast %38 : vector<1x1x8x256xf32> to vector<8x256xf32>
    %40 = vector.broadcast %32 : vector<8x1xf32> to vector<8x256xf32>
    %41 = arith.subf %39, %40 : vector<8x256xf32>
    %42 = arith.mulf %41, %41 : vector<8x256xf32>
    %43 = arith.addf %37, %42 : vector<8x256xf32>
    %c0_40 = arith.constant 0 : index
    %c2_41 = arith.constant 2 : index
    %c0_42 = arith.constant 0 : index
    %c0_43 = arith.constant 0 : index
    %44 = vector.load %arg4[%c0_40, %c2_41, %c0_42, %c0_43] : memref<1x4x8x256xf32, #tpu.memory_space<vmem>>, vector<1x1x8x256xf32>
    %45 = vector.shape_cast %44 : vector<1x1x8x256xf32> to vector<8x256xf32>
    %46 = vector.broadcast %32 : vector<8x1xf32> to vector<8x256xf32>
    %47 = arith.subf %45, %46 : vector<8x256xf32>
    %48 = arith.mulf %47, %47 : vector<8x256xf32>
    %49 = arith.addf %43, %48 : vector<8x256xf32>
    %c0_44 = arith.constant 0 : index
    %c3_45 = arith.constant 3 : index
    %c0_46 = arith.constant 0 : index
    %c0_47 = arith.constant 0 : index
    %50 = vector.load %arg4[%c0_44, %c3_45, %c0_46, %c0_47] : memref<1x4x8x256xf32, #tpu.memory_space<vmem>>, vector<1x1x8x256xf32>
    %51 = vector.shape_cast %50 : vector<1x1x8x256xf32> to vector<8x256xf32>
    %52 = vector.broadcast %32 : vector<8x1xf32> to vector<8x256xf32>
    %53 = arith.subf %51, %52 : vector<8x256xf32>
    %54 = arith.mulf %53, %53 : vector<8x256xf32>
    %55 = arith.addf %49, %54 : vector<8x256xf32>
    %cst_48 = arith.constant dense<0.000000e+00> : vector<8xf32>
    %56 = vector.multi_reduction <add>, %55, %cst_48 [1] : vector<8x256xf32> to vector<8xf32>
    %57 = vector.shape_cast %56 : vector<8xf32> to vector<8x1xf32>
    %cst_49 = arith.constant 9.765625E-4 : f32
    %58 = vector.broadcast %cst_49 : f32 to vector<8x1xf32>
    %59 = arith.mulf %57, %58 : vector<8x1xf32>
    %cst_50 = arith.constant 9.99999974E-6 : f32
    %60 = vector.broadcast %cst_50 : f32 to vector<8x1xf32>
    %61 = arith.addf %59, %60 : vector<8x1xf32>
    %62 = math.rsqrt %61 : vector<8x1xf32>
    %c0_51 = arith.constant 0 : index
    %c0_52 = arith.constant 0 : index
    %c0_53 = arith.constant 0 : index
    %c0_54 = arith.constant 0 : index
    %63 = vector.load %arg4[%c0_51, %c0_52, %c0_53, %c0_54] : memref<1x4x8x256xf32, #tpu.memory_space<vmem>>, vector<1x1x8x256xf32>
    %64 = vector.shape_cast %63 : vector<1x1x8x256xf32> to vector<8x256xf32>
    %65 = vector.broadcast %32 : vector<8x1xf32> to vector<8x256xf32>
    %66 = arith.subf %64, %65 : vector<8x256xf32>
    %67 = vector.broadcast %62 : vector<8x1xf32> to vector<8x256xf32>
    %68 = arith.mulf %66, %67 : vector<8x256xf32>
    %cst_55 = arith.constant 0.000000e+00 : f32
    %69 = vector.broadcast %cst_55 : f32 to vector<8x256xf32>
    %70 = arith.maximumf %68, %69 : vector<8x256xf32>
    %c0_56 = arith.constant 0 : index
    %c0_57 = arith.constant 0 : index
    %c0_58 = arith.constant 0 : index
    %c0_59 = arith.constant 0 : index
    %71 = vector.load %arg4[%c0_56, %c0_57, %c0_58, %c0_59] : memref<1x4x8x256xf32, #tpu.memory_space<vmem>>, vector<1x1x8x256xf32>
    %72 = vector.shape_cast %71 : vector<1x1x8x256xf32> to vector<8x256xf32>
    %73 = vector.shape_cast %70 : vector<8x256xf32> to vector<1x1x8x256xf32>
    tpu.vector_store %arg4[%c0_56, %c0_57, %c0_58, %c0_59], %73 {strides = array<i32>} : memref<1x4x8x256xf32, #tpu.memory_space<vmem>>, vector<1x1x8x256xf32>,
    %c0_60 = arith.constant 0 : index
    %c1_61 = arith.constant 1 : index
    %c0_62 = arith.constant 0 : index
    %c0_63 = arith.constant 0 : index
    %74 = vector.load %arg4[%c0_60, %c1_61, %c0_62, %c0_63] : memref<1x4x8x256xf32, #tpu.memory_space<vmem>>, vector<1x1x8x256xf32>
    %75 = vector.shape_cast %74 : vector<1x1x8x256xf32> to vector<8x256xf32>
    %76 = vector.broadcast %32 : vector<8x1xf32> to vector<8x256xf32>
    %77 = arith.subf %75, %76 : vector<8x256xf32>
    %78 = vector.broadcast %62 : vector<8x1xf32> to vector<8x256xf32>
    %79 = arith.mulf %77, %78 : vector<8x256xf32>
    %cst_64 = arith.constant 0.000000e+00 : f32
    %80 = vector.broadcast %cst_64 : f32 to vector<8x256xf32>
    %81 = arith.maximumf %79, %80 : vector<8x256xf32>
    %c0_65 = arith.constant 0 : index
    %c1_66 = arith.constant 1 : index
    %c0_67 = arith.constant 0 : index
    %c0_68 = arith.constant 0 : index
    %82 = vector.load %arg4[%c0_65, %c1_66, %c0_67, %c0_68] : memref<1x4x8x256xf32, #tpu.memory_space<vmem>>, vector<1x1x8x256xf32>
    %83 = vector.shape_cast %82 : vector<1x1x8x256xf32> to vector<8x256xf32>
    %84 = vector.shape_cast %81 : vector<8x256xf32> to vector<1x1x8x256xf32>
    tpu.vector_store %arg4[%c0_65, %c1_66, %c0_67, %c0_68], %84 {strides = array<i32>} : memref<1x4x8x256xf32, #tpu.memory_space<vmem>>, vector<1x1x8x256xf32>,
    %c0_69 = arith.constant 0 : index
    %c2_70 = arith.constant 2 : index
    %c0_71 = arith.constant 0 : index
    %c0_72 = arith.constant 0 : index
    %85 = vector.load %arg4[%c0_69, %c2_70, %c0_71, %c0_72] : memref<1x4x8x256xf32, #tpu.memory_space<vmem>>, vector<1x1x8x256xf32>
    %86 = vector.shape_cast %85 : vector<1x1x8x256xf32> to vector<8x256xf32>
    %87 = vector.broadcast %32 : vector<8x1xf32> to vector<8x256xf32>
    %88 = arith.subf %86, %87 : vector<8x256xf32>
    %89 = vector.broadcast %62 : vector<8x1xf32> to vector<8x256xf32>
    %90 = arith.mulf %88, %89 : vector<8x256xf32>
    %cst_73 = arith.constant 0.000000e+00 : f32
    %91 = vector.broadcast %cst_73 : f32 to vector<8x256xf32>
    %92 = arith.maximumf %90, %91 : vector<8x256xf32>
    %c0_74 = arith.constant 0 : index
    %c2_75 = arith.constant 2 : index
    %c0_76 = arith.constant 0 : index
    %c0_77 = arith.constant 0 : index
    %93 = vector.load %arg4[%c0_74, %c2_75, %c0_76, %c0_77] : memref<1x4x8x256xf32, #tpu.memory_space<vmem>>, vector<1x1x8x256xf32>
    %94 = vector.shape_cast %93 : vector<1x1x8x256xf32> to vector<8x256xf32>
    %95 = vector.shape_cast %92 : vector<8x256xf32> to vector<1x1x8x256xf32>
    tpu.vector_store %arg4[%c0_74, %c2_75, %c0_76, %c0_77], %95 {strides = array<i32>} : memref<1x4x8x256xf32, #tpu.memory_space<vmem>>, vector<1x1x8x256xf32>,
    %c0_78 = arith.constant 0 : index
    %c3_79 = arith.constant 3 : index
    %c0_80 = arith.constant 0 : index
    %c0_81 = arith.constant 0 : index
    %96 = vector.load %arg4[%c0_78, %c3_79, %c0_80, %c0_81] : memref<1x4x8x256xf32, #tpu.memory_space<vmem>>, vector<1x1x8x256xf32>
    %97 = vector.shape_cast %96 : vector<1x1x8x256xf32> to vector<8x256xf32>
    %98 = vector.broadcast %32 : vector<8x1xf32> to vector<8x256xf32>
    %99 = arith.subf %97, %98 : vector<8x256xf32>
    %100 = vector.broadcast %62 : vector<8x1xf32> to vector<8x256xf32>
    %101 = arith.mulf %99, %100 : vector<8x256xf32>
    %cst_82 = arith.constant 0.000000e+00 : f32
    %102 = vector.broadcast %cst_82 : f32 to vector<8x256xf32>
    %103 = arith.maximumf %101, %102 : vector<8x256xf32>
    %c0_83 = arith.constant 0 : index
    %c3_84 = arith.constant 3 : index
    %c0_85 = arith.constant 0 : index
    %c0_86 = arith.constant 0 : index
    %104 = vector.load %arg4[%c0_83, %c3_84, %c0_85, %c0_86] : memref<1x4x8x256xf32, #tpu.memory_space<vmem>>, vector<1x1x8x256xf32>
    %105 = vector.shape_cast %104 : vector<1x1x8x256xf32> to vector<8x256xf32>
    %106 = vector.shape_cast %103 : vector<8x256xf32> to vector<1x1x8x256xf32>
    tpu.vector_store %arg4[%c0_83, %c3_84, %c0_85, %c0_86], %106 {strides = array<i32>} : memref<1x4x8x256xf32, #tpu.memory_space<vmem>>, vector<1x1x8x256xf32>,
    return
  }
  func.func @transform_0(%arg0: i32, %arg1: i32) -> (i32, i32, i32) {
    %c0_i32 = arith.constant 0 : i32
    %c0_i32_0 = arith.constant 0 : i32
    %c0_i32_1 = arith.constant 0 : i32
    return %arg0, %c0_i32, %c0_i32_0 : i32, i32, i32
  }
  func.func @transform_1(%arg0: i32, %arg1: i32) -> (i32, i32, i32) {
    %c0_i32 = arith.constant 0 : i32
    %c0_i32_0 = arith.constant 0 : i32
    %c0_i32_1 = arith.constant 0 : i32
    return %c0_i32, %arg1, %c0_i32_0 : i32, i32, i32
  }
  func.func @transform_2(%arg0: i32, %arg1: i32) -> (i32, i32, i32, i32) {
    %c0_i32 = arith.constant 0 : i32
    %c0_i32_0 = arith.constant 0 : i32
    %c0_i32_1 = arith.constant 0 : i32
    return %arg0, %c0_i32, %arg1, %c0_i32_0 : i32, i32, i32, i32
  }
}

</mosaic_0001>

<bundles_post_ra>
// kernel: unet_up.1
= control target key start
LH: loop header
LB: loop body
LE: loop exit
PB: predicated region body
PF: predicated region fallthrough
CT: control target
= control target key end

     0   :  { %s679_s9 = smov 0   ;;  %s681_s10 = smov 0   ;;  %s736_s0 = inlined_call_operand.vmem [shape: bf16[2,36,256], index: 0, kind: input, shape index: {}]   ;;  %s737_s1 = inlined_call_operand.vmem [shape: bf16[4,8,36], index: 1, kind: input, shape index: {}]   ;;  %s738_s2 = inlined_call_operand.vmem [shape: f32[2,4,8,256], index: 2, kind: output, shape index: {}]  }
   0x1   :  { %s683_s11 = smov 0  }
   0x2 LB: > { %s24_s12 = sadd.s32 1, %s658_s10  ;;  %p551_p0 = scmp.ge.s32.totalorder %s662_s11, 1  ;;  %s662_s11 = sphi %s683_s11, %s12_s11   ;;  %s658_s10 = sphi %s681_s10, %s740_s10   ;;  %s654_s9 = sphi %s679_s9, %s739_s9  }
   0x3   : > { %p26_p1 = scmp.ge.s32.totalorder %s24_s12, 2  ;;  %p135_p2 = scmp.lt.s32.totalorder %s662_s11, 3 }
   0x5   : > { %s742_s12 = smov (%p26_p1, %s24_s12), 0  ;;  %p136_p3 = pnand %p551_p0, %p135_p2 }
   0x6   : > { %p165_p4 = scmp.lt.s32.totalorder (!%p136_p3), %s654_s9, 1 }
   0x7   : > { %139 = sbr.rel (%p136_p3) target bundleno = 466 (0x1d2), region = 28 }
   0xc   : > { %s744_s9 = smov (!%p165_p4, %s654_s9), 1  ;;  %vm219_vm0 = vcmask 1041408   ;;  %v189_v19 = vld [vmem:[%s737_s1] sm:$0xf]  ;;  %vm215_vm1 = vcmask 293888  }
   0xd   : > { %s613_s13 = smul.u32 40, %s744_s9  ;;  %v573_v20 = vld [vmem:[%s737_s1 + $0x4] sm:$0xf]  ;;  %v578_v21 = vld [vmem:[%s737_s1 + $0x8] sm:$0xf]  ;;  %s608_s25 = sshll.u32 %s744_s9, 6 }
   0xe   : > { %v583_v22 = vld [vmem:[%s737_s1 + $0xc] sm:$0xf]  ;;  %s182_s28 = scalar_lea.vmem %s738_s2, %s608_s25 }
   0xf   : > { %s169_s16 = scalar_lea.vmem %s736_s0, %s613_s13 }
  0x10   : > { %v188_v0 = vld [vmem:[%s169_s16 + $0x20] sm:$0x33]  ;;  %v565_v3 = vld [vmem:[%s169_s16 + $0x10] sm:$0xf]  ;;  %v612_v6 = vld [vmem:[%s169_s16 + $0x14] sm:$0xf0] }
  0x11   : > { %v203_v1 = vunpack.c.l.b16 %v188_v0  ;;  %v204_v2 = vunpack.c.h.b16 %v188_v0  ;;  %v611_v7 = vld [vmem:[%s169_s16 + $0x14] sm:$0xf]  ;;  %v567_v8 = vld [vmem:[%s169_s16 + $0x18] sm:$0xf0]  ;;  %v566_v11 = vor.u32 %v612_v6, %v565_v3  ;;  %v557_v13 = vld [vmem:[%s169_s16] sm:$0xf] }
  0x12   : > { %v570_v12 = vor.u32 %v611_v7, %v567_v8  ;;  %v610_v14 = vld [vmem:[%s169_s16 + $0x4] sm:$0xf0]  ;;  %v609_v15 = vld [vmem:[%s169_s16 + $0x4] sm:$0xf]  ;;  %v559_v16 = vld [vmem:[%s169_s16 + $0x8] sm:$0xf0] }
  0x13   : > { %v209_v4 = vpack.c.b16 %v203_v1, %v203_v1  ;;  %v210_v5 = vpack.c.b16 %v204_v2, %v204_v2  ;;  %v558_v17 = vor.u32 %v610_v14, %v557_v13  ;;  %v562_v18 = vor.u32 %v609_v15, %v559_v16 }
  0x15   : > { %v221_v9 = vsel %vm219_vm0, %v209_v4, 0  ;;  %v224_v10 = vsel %vm219_vm0, %v210_v5, 0 }
  0x16   : > { %231 = vmatpush.bf16.msra.mxu0 %v221_v9  ;;  %244 = vmatpush.bf16.msra.mxu1 %v224_v10 }
  0x17   : > { %264 = vmatpush.bf16.msra.mxu2 %v221_v9  ;;  %277 = vmatpush.bf16.msra.mxu3 %v224_v10 }
  0x1a   : > { %232 = vmatpush.bf16.msra.mxu0 %v566_v11  ;;  %245 = vmatpush.bf16.msra.mxu1 %v570_v12 }
  0x1b   : > { %265 = vmatpush.bf16.msra.mxu2 %v566_v11  ;;  %278 = vmatpush.bf16.msra.mxu3 %v570_v12 }
  0x1e   : > { %233 = vmatpush.bf16.msra.mxu0 %v558_v17  ;;  %246 = vmatpush.bf16.msra.mxu1 %v562_v18 }
  0x1f   : > { %266 = vmatpush.bf16.msra.mxu2 %v558_v17  ;;  %279 = vmatpush.bf16.msra.mxu3 %v562_v18 }
  0x21   : > { %571 = vmatmul.msk.bf16.vlgmr.msra.gmra.mxu0 %vm215_vm1, %v189_v19  ;;  %572 = vmatmul.msk.bf16.vlgmr.msra.gmra.mxu1 %vm215_vm1, %v189_v19 }
  0x22   : > { %574 = vmatmul.msk.bf16.vlgmr.msra.gmra.mxu2 %vm215_vm1, %v573_v20  ;;  %575 = vmatmul.msk.bf16.vlgmr.msra.gmra.mxu3 %vm215_vm1, %v573_v20 }
  0x23   : > { %336 = vmatpush.bf16.msrb.mxu2 %v221_v9  ;;  %349 = vmatpush.bf16.msrb.mxu3 %v224_v10 }
  0x24   : > { %300 = vmatpush.bf16.msrb.mxu0 %v221_v9  ;;  %313 = vmatpush.bf16.msrb.mxu1 %v224_v10 }
  0x27   : > { %337 = vmatpush.bf16.msrb.mxu2 %v566_v11  ;;  %350 = vmatpush.bf16.msrb.mxu3 %v570_v12 }
  0x28   : > { %301 = vmatpush.bf16.msrb.mxu0 %v566_v11  ;;  %314 = vmatpush.bf16.msrb.mxu1 %v570_v12 }
  0x2b   : > { %338 = vmatpush.bf16.msrb.mxu2 %v558_v17  ;;  %351 = vmatpush.bf16.msrb.mxu3 %v562_v18 }
  0x2c   : > { %302 = vmatpush.bf16.msrb.mxu0 %v558_v17  ;;  %315 = vmatpush.bf16.msrb.mxu1 %v562_v18 }
  0x31   : > { %579 = vmatmul.msk.bf16.vlgmr.msrb.gmra.mxu0 %vm215_vm1, %v578_v21  ;;  %580 = vmatmul.msk.bf16.vlgmr.msrb.gmra.mxu1 %vm215_vm1, %v578_v21 }
  0x32   : > { %584 = vmatmul.msk.bf16.vlgmr.msrb.gmra.mxu2 %vm215_vm1, %v583_v22  ;;  %585 = vmatmul.msk.bf16.vlgmr.msrb.gmra.mxu3 %vm215_vm1, %v583_v22 }
  0x9e   : > { %v235_v23 = vpop.f32.mrf.mxu0  ;;  %v248_v24 = vpop.f32.mrf.mxu1 }
  0xa5   : > { %v268_v25 = vpop.f32.mrf.mxu2  ;;  %v281_v26 = vpop.f32.mrf.mxu3 }
  0xa6   : > { %v237_v27 = vpop.f32.mrf.mxu0  ;;  %v250_v28 = vpop.f32.mrf.mxu1  ;;  %v288_v33 = vadd.f32 %v268_v25, %v235_v23  ;;  %v289_v34 = vadd.f32 %v281_v26, %v248_v24 }
  0xad   : > { %v270_v29 = vpop.f32.mrf.mxu2  ;;  %v283_v30 = vpop.f32.mrf.mxu3 }
  0xae   : > { %v304_v31 = vpop.f32.mrf.mxu0  ;;  %v317_v32 = vpop.f32.mrf.mxu1 }
  0xaf   : > { %v324_v35 = vadd.f32 %v304_v31, %v288_v33  ;;  %v325_v36 = vadd.f32 %v317_v32, %v289_v34 }
  0xb5   : > { %v340_v37 = vpop.f32.mrf.mxu2  ;;  %v353_v38 = vpop.f32.mrf.mxu3 }
  0xb6   : > { %v360_v39 = vadd.f32 %v340_v37, %v324_v35  ;;  %v361_v40 = vadd.f32 %v353_v38, %v325_v36  ;;  %v306_v41 = vpop.f32.mrf.mxu0  ;;  %v319_v42 = vpop.f32.mrf.mxu1 }
  0xb8   : > { %v362_v43 = vadd.f32 %v361_v40, %v360_v39 }
  0xba   : > { %363 = vadd.xlane.f32.xlu0 %v362_v43 }
  0xbd   : > { %v342_v44 = vpop.f32.mrf.mxu2  ;;  %v355_v45 = vpop.f32.mrf.mxu3 }
 0x12d   : > { %v364_v46 = vpop.xlane.xlu0 %363 }
 0x12e   : > { %v365_v47 = vmul.f32 0.0009765625, %v364_v46 }
 0x130   : > { %v368_v48 = vsub.f32 %v235_v23, %v365_v47  ;;  %v369_v49 = vsub.f32 %v248_v24, %v365_v47  ;;  %v374_v50 = vsub.f32 %v268_v25, %v365_v47  ;;  %v375_v51 = vsub.f32 %v281_v26, %v365_v47 }
 0x131   : > { %v382_v52 = vsub.f32 %v304_v31, %v365_v47  ;;  %v383_v53 = vsub.f32 %v317_v32, %v365_v47  ;;  %v390_v54 = vsub.f32 %v340_v37, %v365_v47  ;;  %v391_v55 = vsub.f32 %v353_v38, %v365_v47 }
 0x132   : > { %v370_v56 = vmul.f32 %v368_v48, %v368_v48  ;;  %v371_v57 = vmul.f32 %v369_v49, %v369_v49  ;;  %v376_v58 = vmul.f32 %v374_v50, %v374_v50  ;;  %v377_v59 = vmul.f32 %v375_v51, %v375_v51 }
 0x133   : > { %v384_v62 = vmul.f32 %v382_v52, %v382_v52  ;;  %v385_v63 = vmul.f32 %v383_v53, %v383_v53  ;;  %v392_v2 = vmul.f32 %v390_v54, %v390_v54  ;;  %v393_v3 = vmul.f32 %v391_v55, %v391_v55 }
 0x134   : > { %v378_v60 = vadd.f32 %v376_v58, %v370_v56  ;;  %v379_v61 = vadd.f32 %v377_v59, %v371_v57 }
 0x136   : > { %v386_v0 = vadd.f32 %v384_v62, %v378_v60  ;;  %v387_v1 = vadd.f32 %v385_v63, %v379_v61 }
 0x138   : > { %v394_v4 = vadd.f32 %v392_v2, %v386_v0  ;;  %v395_v5 = vadd.f32 %v393_v3, %v387_v1 }
 0x13a   : > { %v396_v6 = vadd.f32 %v395_v5, %v394_v4 }
 0x13c   : > { %397 = vadd.xlane.f32.xlu0 %v396_v6 }
 0x1af   : > { %v398_v7 = vpop.xlane.xlu0 %397 }
 0x1b0   : > { %v399_v8 = vmul.f32 0.0009765625, %v398_v7 }
 0x1b2   : > { %v400_v9 = vadd.f32 1e-05, %v399_v8 }
 0x1b4   : > { %638 = vrsqrt.f32 %v400_v9  ;;  %vm407_vm3 = vweird.f32 %v400_v9 }
 0x1ba   : > { %v639_v10 = vpop.eup %638 }
 0x1bb   : > { %v402_v11 = vmul.f32 %v639_v10, %v400_v9  ;;  %vm408_vm2 = vweird.f32 %v639_v10 }
 0x1bc   : > { %vm409_vm4 = vmor %vm407_vm3, %vm408_vm2 }
 0x1bd   : > { %v403_v12 = vmul.f32 %v639_v10, %v402_v11 }
 0x1bf   : > { %v404_v13 = vmul.f32 0.5, %v403_v12 }
 0x1c1   : > { %v405_v14 = vsub.f32 1.5, %v404_v13 }
 0x1c3   : > { %v406_v15 = vmul.f32 %v639_v10, %v405_v14 }
 0x1c5   : > { %v410_v16 = vsel %vm409_vm4, %v639_v10, %v406_v15 }
 0x1c6   : > { %v411_v17 = vmul.f32 %v410_v16, %v368_v48  ;;  %v412_v18 = vmul.f32 %v410_v16, %v369_v49  ;;  %v421_v19 = vmul.f32 %v410_v16, %v374_v50  ;;  %v422_v20 = vmul.f32 %v410_v16, %v375_v51 }
 0x1c7   : > { %v431_v21 = vmul.f32 %v410_v16, %v382_v52  ;;  %v432_v22 = vmul.f32 %v410_v16, %v383_v53  ;;  %v441_v26 = vmul.f32 %v410_v16, %v390_v54  ;;  %v442_v28 = vmul.f32 %v410_v16, %v391_v55 }
 0x1c8   : > { %v413_v23 = vmax.f32 %v411_v17, 0.0  ;;  %v414_v24 = vmax.f32 %v412_v18, 0.0  ;;  %v423_v25 = vmax.f32 %v421_v19, 0.0  ;;  %v424_v27 = vmax.f32 %v422_v20, 0.0 }
 0x1c9   : > { %v433_v29 = vmax.f32 %v431_v21, 0.0  ;;  %v434_v30 = vmax.f32 %v432_v22, 0.0  ;;  %v443_v31 = vmax.f32 %v441_v26, 0.0  ;;  %v444_v32 = vmax.f32 %v442_v28, 0.0 }
 0x1ca   : > { %415 = vst [vmem:[%s182_s28] sm:$0xff] %v413_v23 }
 0x1cb   : > { %416 = vst [vmem:[%s182_s28 + $0x8] sm:$0xff] %v414_v24 }
 0x1cc   : > { %596 = vst [vmem:[%s182_s28 + $0x10] sm:$0xff] %v423_v25 }
 0x1cd   : > { %597 = vst [vmem:[%s182_s28 + $0x18] sm:$0xff] %v424_v27 }
 0x1ce   : > { %600 = vst [vmem:[%s182_s28 + $0x20] sm:$0xff] %v433_v29 }
 0x1cf   : > { %601 = vst [vmem:[%s182_s28 + $0x28] sm:$0xff] %v434_v30 }
 0x1d0   : > { %604 = vst [vmem:[%s182_s28 + $0x30] sm:$0xff] %v443_v31 }
 0x1d1   : > { %605 = vst [vmem:[%s182_s28 + $0x38] sm:$0xff] %v444_v32 }
 0x1d2 PF: > { %s12_s11 = sadd.s32 1, %s662_s11   ;;  %s739_s9 = smov %s658_s10 }
 0x1d3   : > { %p9_p5 = scmp.ge.s32.totalorder %s12_s11, 4   ;;  %s740_s10 = smov %s742_s12 }
 0x1d5   :  { %11 = sbr.rel (!%p9_p5) target bundleno = 2 (0x2), region = 67 }

</bundles_post_ra>
